<compile_context>
chip_gen: v6e
topology: v6e:2x2x1
jax: 0.10.0
libtpu: 0.0.40
codegen_flags: <defaults>
</compile_context>

<pallas_src>
import jax
import jax.numpy as jnp
from jax.experimental import pallas as pl
from jax.experimental.pallas import tpu as pltpu

HIDDEN = 128


def value_net_kernel(s_ref, a_ref, w1_ref, b1_ref, w2_ref, b2_ref,
                     w3_ref, b3_ref, o_ref):
    # fc1: concat(state, action) @ W1 as a single MXU dot (one K = sd+ad matmul).
    x = jnp.concatenate([s_ref[...], a_ref[...]], axis=-1)        # [TB, sd+ad] bf16
    h1 = jnp.dot(x, w1_ref[...], preferred_element_type=jnp.float32) + b1_ref[...]
    h1 = jnp.maximum(h1, 0.0)                                     # [TB, H] f32

    # fc2 (bf16 MXU, f32 accumulate / epilogue).
    h2 = jnp.dot(h1.astype(jnp.bfloat16), w2_ref[...],
                 preferred_element_type=jnp.float32) + b2_ref[...]
    h2 = jnp.maximum(h2, 0.0)                                     # [TB, H] f32

    # fc3 (H -> 1): w3 @ h2^T (same contraction pattern as q @ k^T) -> lane-dense row.
    # w3 is zero-padded to [8, H]; only row 0 is real.
    q = jnp.einsum('oh,th->ot', w3_ref[...], h2,
                   preferred_element_type=jnp.float32)            # [8, TB] f32
    o_ref[...] = (q[0:1, :] + b3_ref[0, 0]).astype(o_ref.dtype)   # [1, TB]


def _round_up(x, m):
    return ((x + m - 1) // m) * m


def value_network_forward(state, action, params):
    """state: [B, state_dim], action: [B, action_dim] -> [B, 1] (float32)."""
    w1, b1, w2, b2, w3_pad, b3 = params
    B, sd = state.shape
    ad = action.shape[1]
    d_in, H = w1.shape

    state = state.astype(jnp.bfloat16)
    action = action.astype(jnp.bfloat16)

    # Batch tiling:
    #  * small batches: one tile, rounded up to 16 rows (bf16 sublane packing),
    #  * large batches: up to 1024-row tiles (amortize per-step overhead; fits the
    #    default scoped VMEM on all of v5e/v6e/v7x) while keeping >= 2 tiles so both
    #    v7x TensorCores get work on the "parallel" batch axis.
    if B <= 256:
        TB = _round_up(B, 16)
    else:
        TB = min(1024, _round_up((B + 1) // 2, 256))
    num_tiles = (B + TB - 1) // TB
    B_pad = num_tiles * TB
    if B_pad != B:
        state = jnp.pad(state, ((0, B_pad - B), (0, 0)))
        action = jnp.pad(action, ((0, B_pad - B), (0, 0)))

    tiled = lambda shape: pl.BlockSpec(shape, lambda i: (i, 0))       # streamed
    resident = lambda shape: pl.BlockSpec(shape, lambda i: (0, 0))    # stays in VMEM

    weight_bytes = (w1.size * 2 + b1.size * 4 + w2.size * 2 + b2.size * 4
                    + w3_pad.size * 4 + b3.size * 4)
    cost = pl.CostEstimate(
        flops=2 * B_pad * (d_in * H + H * H + 8 * H),
        transcendentals=0,
        bytes_accessed=B_pad * (sd + ad) * 2 + B_pad * 4 + weight_bytes)

    out = pl.pallas_call(
        value_net_kernel,
        out_shape=jax.ShapeDtypeStruct((1, B_pad), jnp.float32),
        grid=(num_tiles,),
        in_specs=[
            tiled((TB, sd)),                       # state tile, bf16
            tiled((TB, ad)),                       # action tile, bf16
            resident((d_in, H)),                   # W1, bf16
            resident((1, H)),                      # b1, f32
            resident((H, H)),                      # W2, bf16
            resident((1, H)),                      # b2, f32
            resident((8, H)),                      # w3 (row 0 real, rows 1..7 zero), f32
            pl.BlockSpec(memory_space=pltpu.MemorySpace.SMEM),   # b3 scalar
        ],
        out_specs=pl.BlockSpec((1, TB), lambda i: (0, i)),       # lane-dense row output
        compiler_params=pltpu.CompilerParams(
            dimension_semantics=("parallel",)),    # shard batch tiles across TCs (v7x)
        cost_estimate=cost,
    )(state, action, w1, b1, w2, b2, w3_pad, b3)
    return out[0, :B, None]                        # (B, 1); padded tail discarded


def init_params(key, state_dim, action_dim, hidden=HIDDEN):
    """PyTorch nn.Linear-style init (uniform +/- 1/sqrt(fan_in)).

    W1/W2 stored as [in, out] bf16; biases f32.  W3 is stored transposed and
    zero-padded to [8, hidden] f32 (row 0 is the real weight row).
    """
    d_in = state_dim + action_dim
    keys = jax.random.split(key, 6)

    def lin(kw, kb, fan_in, fan_out):
        bound = 1.0 / jnp.sqrt(jnp.float32(fan_in))
        w = jax.random.uniform(kw, (fan_in, fan_out), jnp.float32, -bound, bound)
        b = jax.random.uniform(kb, (1, fan_out), jnp.float32, -bound, bound)
        return w, b

    w1, b1 = lin(keys[0], keys[1], d_in, hidden)      # [d_in, H], [1, H]
    w2, b2 = lin(keys[2], keys[3], hidden, hidden)    # [H, H],   [1, H]
    w3, b3 = lin(keys[4], keys[5], hidden, 1)         # [H, 1],   [1, 1]

    w3_pad = jnp.zeros((8, hidden), jnp.float32).at[0, :].set(w3[:, 0])
    return (w1.astype(jnp.bfloat16), b1, w2.astype(jnp.bfloat16), b2, w3_pad, b3)


def reference_forward(state, action, params):
    """Pure-JAX reference mirroring the kernel's bf16/f32 mixed precision."""
    w1, b1, w2, b2, w3_pad, b3 = params
    x = jnp.concatenate([state, action], axis=-1).astype(jnp.bfloat16)
    h1 = jnp.maximum(jnp.dot(x, w1, preferred_element_type=jnp.float32) + b1, 0.0)
    h2 = jnp.maximum(jnp.dot(h1.astype(jnp.bfloat16), w2,
                             preferred_element_type=jnp.float32) + b2, 0.0)
    return h2 @ w3_pad[0:1].T + b3


if __name__ == "__main__":
    key = jax.random.PRNGKey(0)
    k_s, k_a, k_p, k_s2, k_a2 = jax.random.split(key, 5)

    state_dim, action_dim = 8, 8
    params = init_params(k_p, state_dim, action_dim)

    # Small batch (single grid step, small-tile path).
    batch = 8
    state = jax.random.normal(k_s, (batch, state_dim), jnp.float32)
    action = jax.random.normal(k_a, (batch, action_dim), jnp.float32)
    out = jax.block_until_ready(value_network_forward(state, action, params))
    ref = reference_forward(state, action, params)
    assert out.shape == (batch, 1), out.shape
    assert jnp.allclose(out, ref, atol=2e-3, rtol=2e-3), (out, ref)

    # Larger batch exercising the multi-tile "parallel" path (TB=256, 2 tiles, padded tail).
    batch2 = 300
    state2 = jax.random.normal(k_s2, (batch2, state_dim), jnp.float32)
    action2 = jax.random.normal(k_a2, (batch2, action_dim), jnp.float32)
    out2 = jax.block_until_ready(value_network_forward(state2, action2, params))
    ref2 = reference_forward(state2, action2, params)
    assert out2.shape == (batch2, 1), out2.shape
    assert jnp.allclose(out2, ref2, atol=2e-3, rtol=2e-3), (out2, ref2)

    print("KERNEL_OK")
</pallas_src>

<mosaic_0001>
module attributes {stable_mosaic.version = 11 : i64} {
  func.func @value_net_kernel(%arg0: i32, %arg1: memref<16x8xbf16, #tpu.memory_space<vmem>>, %arg2: memref<16x8xbf16, #tpu.memory_space<vmem>>, %arg3: memref<16x128xbf16, #tpu.memory_space<vmem>>, %arg4: memref<1x128xf32, #tpu.memory_space<vmem>>, %arg5: memref<128x128xbf16, #tpu.memory_space<vmem>>, %arg6: memref<1x128xf32, #tpu.memory_space<vmem>>, %arg7: memref<8x128xf32, #tpu.memory_space<vmem>>, %arg8: memref<1x1xf32, #tpu.memory_space<smem>>, %arg9: memref<1x16xf32, #tpu.memory_space<vmem>>) attributes {dimension_semantics = [#tpu.dimension_semantics<parallel>], iteration_bounds = array<i64: 1>, scalar_prefetch = 0 : i64, scratch_operands = 0 : i64, tpu.core_type = #tpu.core_type<tc>, window_params = [{transform_indices = @transform_0, window_bounds = array<i64: 16, 8>}, {transform_indices = @transform_1, window_bounds = array<i64: 16, 8>}, {pipeline_mode = #tpu.pipeline_mode<synchronous>, transform_indices = @transform_2, window_bounds = array<i64: 16, 128>}, {pipeline_mode = #tpu.pipeline_mode<synchronous>, transform_indices = @transform_3, window_bounds = array<i64: 1, 128>}, {pipeline_mode = #tpu.pipeline_mode<synchronous>, transform_indices = @transform_4, window_bounds = array<i64: 128, 128>}, {pipeline_mode = #tpu.pipeline_mode<synchronous>, transform_indices = @transform_5, window_bounds = array<i64: 1, 128>}, {pipeline_mode = #tpu.pipeline_mode<synchronous>, transform_indices = @transform_6, window_bounds = array<i64: 8, 128>}, {transform_indices = @transform_7, window_bounds = array<i64: 1, 1>}, {transform_indices = @transform_8, window_bounds = array<i64: 1, 16>}]} {
    %c0 = arith.constant 0 : index
    %c0_0 = arith.constant 0 : index
    %0 = vector.load %arg1[%c0, %c0_0] : memref<16x8xbf16, #tpu.memory_space<vmem>>, vector<16x8xbf16>
    %c0_1 = arith.constant 0 : index
    %c0_2 = arith.constant 0 : index
    %1 = vector.load %arg2[%c0_1, %c0_2] : memref<16x8xbf16, #tpu.memory_space<vmem>>, vector<16x8xbf16>
    %2 = tpu.concatenate %0, %1 in 1 : vector<16x8xbf16>, vector<16x8xbf16> -> vector<16x16xbf16>
    %c0_3 = arith.constant 0 : index
    %c0_4 = arith.constant 0 : index
    %3 = vector.load %arg3[%c0_3, %c0_4] : memref<16x128xbf16, #tpu.memory_space<vmem>>, vector<16x128xbf16>
    %cst = arith.constant dense<0.000000e+00> : vector<16x128xf32>
    %4 = tpu.matmul %2, %3, %cst {dimension_numbers = #tpu.dot_dimension_numbers<[1], [0], [0], [1], [0, 0, 1, 1], [], []>} : vector<16x16xbf16>, vector<16x128xbf16>, vector<16x128xf32> -> vector<16x128xf32>
    %c0_5 = arith.constant 0 : index
    %c0_6 = arith.constant 0 : index
    %5 = vector.load %arg4[%c0_5, %c0_6] : memref<1x128xf32, #tpu.memory_space<vmem>>, vector<1x128xf32>
    %6 = vector.broadcast %5 : vector<1x128xf32> to vector<16x128xf32>
    %7 = arith.addf %4, %6 : vector<16x128xf32>
    %cst_7 = arith.constant 0.000000e+00 : f32
    %8 = vector.broadcast %cst_7 : f32 to vector<16x128xf32>
    %9 = arith.maximumf %7, %8 : vector<16x128xf32>
    %10 = arith.truncf %9 : vector<16x128xf32> to vector<16x128xbf16>
    %c0_8 = arith.constant 0 : index
    %c0_9 = arith.constant 0 : index
    %11 = vector.load %arg5[%c0_8, %c0_9] : memref<128x128xbf16, #tpu.memory_space<vmem>>, vector<128x128xbf16>
    %cst_10 = arith.constant dense<0.000000e+00> : vector<16x128xf32>
    %12 = tpu.matmul %10, %11, %cst_10 {dimension_numbers = #tpu.dot_dimension_numbers<[1], [0], [0], [1], [0, 0, 1, 1], [], []>} : vector<16x128xbf16>, vector<128x128xbf16>, vector<16x128xf32> -> vector<16x128xf32>
    %c0_11 = arith.constant 0 : index
    %c0_12 = arith.constant 0 : index
    %13 = vector.load %arg6[%c0_11, %c0_12] : memref<1x128xf32, #tpu.memory_space<vmem>>, vector<1x128xf32>
    %14 = vector.broadcast %13 : vector<1x128xf32> to vector<16x128xf32>
    %15 = arith.addf %12, %14 : vector<16x128xf32>
    %cst_13 = arith.constant 0.000000e+00 : f32
    %16 = vector.broadcast %cst_13 : f32 to vector<16x128xf32>
    %17 = arith.maximumf %15, %16 : vector<16x128xf32>
    %c0_14 = arith.constant 0 : index
    %c0_15 = arith.constant 0 : index
    %18 = vector.load %arg7[%c0_14, %c0_15] : memref<8x128xf32, #tpu.memory_space<vmem>>, vector<8x128xf32>
    "tpu.trace_start"() <{level = 10 : i32, message = "oh,th->ot"}> : () -> ()
    %cst_16 = arith.constant dense<0.000000e+00> : vector<8x16xf32>
    %19 = tpu.matmul %18, %17, %cst_16 {dimension_numbers = #tpu.dot_dimension_numbers<[1], [1], [0], [0], [0, 0, 1, 0], [], []>} : vector<8x128xf32>, vector<16x128xf32>, vector<8x16xf32> -> vector<8x16xf32>
    "tpu.trace_stop"() : () -> ()
    %20 = vector.extract_strided_slice %19 {offsets = [0, 0], sizes = [1, 16], strides = [1, 1]} : vector<8x16xf32> to vector<1x16xf32>
    %c0_17 = arith.constant 0 : index
    %c0_18 = arith.constant 0 : index
    %21 = memref.load %arg8[%c0_17, %c0_18] : memref<1x1xf32, #tpu.memory_space<smem>>
    %22 = vector.broadcast %21 : f32 to vector<1x16xf32>
    %23 = arith.addf %20, %22 : vector<1x16xf32>
    %c0_19 = arith.constant 0 : index
    %c0_20 = arith.constant 0 : index
    %24 = vector.load %arg9[%c0_19, %c0_20] : memref<1x16xf32, #tpu.memory_space<vmem>>, vector<1x16xf32>
    tpu.vector_store %arg9[%c0_19, %c0_20], %23 {strides = array<i32>} : memref<1x16xf32, #tpu.memory_space<vmem>>, vector<1x16xf32>,
    return
  }
  func.func @transform_0(%arg0: i32) -> (i32, i32) {
    %c0_i32 = arith.constant 0 : i32
    %c0_i32_0 = arith.constant 0 : i32
    return %arg0, %c0_i32 : i32, i32
  }
  func.func @transform_1(%arg0: i32) -> (i32, i32) {
    %c0_i32 = arith.constant 0 : i32
    %c0_i32_0 = arith.constant 0 : i32
    return %arg0, %c0_i32 : i32, i32
  }
  func.func @transform_2(%arg0: i32) -> (i32, i32) {
    %c0_i32 = arith.constant 0 : i32
    %c0_i32_0 = arith.constant 0 : i32
    %c0_i32_1 = arith.constant 0 : i32
    return %c0_i32, %c0_i32_0 : i32, i32
  }
  func.func @transform_3(%arg0: i32) -> (i32, i32) {
    %c0_i32 = arith.constant 0 : i32
    %c0_i32_0 = arith.constant 0 : i32
    %c0_i32_1 = arith.constant 0 : i32
    return %c0_i32, %c0_i32_0 : i32, i32
  }
  func.func @transform_4(%arg0: i32) -> (i32, i32) {
    %c0_i32 = arith.constant 0 : i32
    %c0_i32_0 = arith.constant 0 : i32
    %c0_i32_1 = arith.constant 0 : i32
    return %c0_i32, %c0_i32_0 : i32, i32
  }
  func.func @transform_5(%arg0: i32) -> (i32, i32) {
    %c0_i32 = arith.constant 0 : i32
    %c0_i32_0 = arith.constant 0 : i32
    %c0_i32_1 = arith.constant 0 : i32
    return %c0_i32, %c0_i32_0 : i32, i32
  }
  func.func @transform_6(%arg0: i32) -> (i32, i32) {
    %c0_i32 = arith.constant 0 : i32
    %c0_i32_0 = arith.constant 0 : i32
    %c0_i32_1 = arith.constant 0 : i32
    return %c0_i32, %c0_i32_0 : i32, i32
  }
  func.func @transform_7(%arg0: i32) -> (i32, i32) {
    %c0_i32 = arith.constant 0 : i32
    %c0_i32_0 = arith.constant 0 : i32
    %c0_i32_1 = arith.constant 0 : i32
    return %c0_i32, %c0_i32_0 : i32, i32
  }
  func.func @transform_8(%arg0: i32) -> (i32, i32) {
    %c0_i32 = arith.constant 0 : i32
    %c0_i32_0 = arith.constant 0 : i32
    return %c0_i32, %arg0 : i32, i32
  }
}

</mosaic_0001>

<bundles_post_ra>
// kernel: tpu_custom_call.1
= control target key start
LH: loop header
LB: loop body
LE: loop exit
PB: predicated region body
PF: predicated region fallthrough
CT: control target
= control target key end

     0   :  { %14 = vsyncpa [#allocation4], 0  ;;  %s538_s0 = inlined_call_operand.vmem [shape: bf16[16,8], index: 0, kind: input, shape index: {}]   ;;  %s539_s1 = inlined_call_operand.vmem [shape: bf16[16,8], index: 1, kind: input, shape index: {}]   ;;  %s540_s2 = inlined_call_operand.vmem [shape: bf16[16,128], index: 2, kind: input, shape index: {}]   ;;  %s541_s3 = inlined_call_operand.vmem [shape: f32[1,128], index: 3, kind: input, shape index: {}]   ;;  %s542_s4 = inlined_call_operand.hbm [shape: bf16[128,128], index: 4, kind: input, shape index: {}]   ;;  %s543_s5 = inlined_call_operand.vmem [shape: f32[1,128], index: 5, kind: input, shape index: {}]   ;;  %s544_s6 = inlined_call_operand.vmem [shape: f32[8,128], index: 6, kind: input, shape index: {}]   ;;  %s545_s7 = inlined_call_operand.<no memory space> [shape: f32[1,1], index: 7, kind: input, shape index: {}]   ;;  %s546_s8 = inlined_call_operand.hbm [shape: f32[1,16], index: 8, kind: output, shape index: {}]  }
   0x1   :  { %15 = vsyncpa [#allocation5], 0  ;;  %s456_s27 = smov [#allocation3]  }
   0x2   :  { %s29_s28 = sshll.u32 %s456_s27, 4  ;;  %s30_s28 = int_to_ptr.vmem [resolvable:$true] %s29_s28 }
   0x3   :  { %s420_s29 = scalar_lea.vmem %s30_s28, 1024  ;;  %p425_p1 = scmp.lt.s32.totalorder %s30_s28, %s30_s28 }
   0x4   :  { %p421_p0 = scmp.ne.s32.totalorder %s30_s28, %s420_s29  ;;  %p426_p2 = scmp.lt.s32.totalorder %s420_s29, %s420_s29 }
   0x6   :  { %p427_p3 = por %p426_p2, %p425_p1 }
   0x8   :  { %p428_p4 = pnand %p427_p3, %p421_p0 }
   0xa   :  { %431 = shalt.err (!%p428_p4)
}
   0xb   :  { %s457_s30 = smov 64   ;;  %s458_s9 = smov 4  }
   0xc   :  { %35 = dma.hbm_to_vmem [thread:$0]  %s542_s4, 1024, %s30_s28, [#allocation4], %s457_s30, %s457_s30, %s458_s9  }
   0xd   :  { %452 = dma.done.wait [#allocation4], 1024  }
   0xe   :  { %453 = vsyncadd [#allocation4], 4294966272  ;;  %v459_v0 = vmov 0.0   ;;  %vm460_vm0 = vmmov 0   ;;  %v401_v1 = vld [vmem:[%s539_s1] sm:$0xff]   ;;  %s461_s16 = smov 8   ;;  %v314_v34 = vstv %s545_s7 }
   0xf   :  { %361 = vmatprep.subr.bf16.mxu0 %v459_v0  ;;  %363 = vmatprep.mubr.msk.bf16.mxu0 %vm460_vm0, %v459_v0  ;;  %v402_v2 = vld [vmem:[%s540_s2] sm:$0xff]   ;;  %v404_v3 = vld [vmem:[#allocation3 + $0x38] sm:$0xff]   ;;  %v405_v4 = vld [vmem:[#allocation3 + $0x30] sm:$0xff]   ;;  %vm62_vm1 = vcmask 64512   ;;  %vm81_vm2 = vcmask 130048   ;;  %s462_s22 = smov [#allocation6]  }
  0x10   :  { %367 = vmatprep.subr.bf16.mxu1 %v459_v0  ;;  %383 = vmatprep.mubr.msk.bf16.mxu1 %vm460_vm0, %v459_v0  ;;  %v406_v5 = vld [vmem:[#allocation3 + $0x28] sm:$0xff]   ;;  %v407_v6 = vld [vmem:[#allocation3 + $0x20] sm:$0xff]   ;;  %v408_v7 = vld [vmem:[#allocation3 + $0x18] sm:$0xff]   ;;  %vm316_vm3 = vcmask 122880  }
  0x11   :  { %60 = vrot.lane.b32.xlu0 %v401_v1, %s461_s16  ;;  %362 = vmatpush3.bf16.msra.mxu0 %v402_v2  ;;  %v403_v8 = vld [vmem:[%s538_s0] sm:$0xff]   ;;  %v409_v11 = vld [vmem:[#allocation3 + $0x10] sm:$0xff]   ;;  %v410_v12 = vld [vmem:[#allocation3 + $0x8] sm:$0xff]  }
  0x12   :  { %387 = vmatprep.subr.mxu0 %v459_v0  ;;  %368 = vmatpush3.bf16.msra.mxu1 %v404_v3  ;;  %v411_v13 = vld [vmem:[#allocation3] sm:$0xff]  }
  0x13   :  { %369 = vmatprep.subr.bf16.mxu1 %v459_v0  ;;  %v335_v14 = vld [vmem:[%s541_s3] ss:$0 sm:$0xff] }
  0x14   :  { %v338_v26 = vld [vmem:[%s543_s5] ss:$0 sm:$0xff]  ;;  %s324_s5 = sshll.u32 %s462_s22, 4  ;;  %s325_s5 = int_to_ptr.vmem [resolvable:$true] %s324_s5 }
  0x15   :  { %v242_v33 = vld [vmem:[%s544_s6] sm:$0xff]  ;;  %s432_s23 = scalar_lea.vmem %s325_s5, 16  ;;  %s436_s24 = scalar_lea.vmem %s325_s5, 32 }
  0x16   :  { %370 = vmatpush3.bf16.msra.mxu1 %v405_v4  ;;  %p433_p5 = scmp.ne.s32.totalorder %s325_s5, %s432_s23  ;;  %p437_p6 = scmp.lt.s32.totalorder %s325_s5, %s325_s5 }
  0x17   :  { %371 = vmatprep.subr.bf16.mxu1 %v459_v0  ;;  %p438_p7 = scmp.lt.s32.totalorder %s436_s24, %s432_s23 }
  0x19   :  { %p439_p8 = por %p438_p7, %p437_p6 }
  0x1a   :  { %372 = vmatpush3.bf16.msra.mxu1 %v406_v5 }
  0x1b   :  { %373 = vmatprep.subr.bf16.mxu1 %v459_v0  ;;  %p440_p9 = pnand %p439_p8, %p433_p5 }
  0x1e   :  { %374 = vmatpush3.bf16.msra.mxu1 %v407_v6 }
  0x1f   :  { %375 = vmatprep.subr.bf16.mxu1 %v459_v0 }
  0x22   :  { %376 = vmatpush3.bf16.msra.mxu1 %v408_v7 }
  0x23   :  { %377 = vmatprep.subr.bf16.mxu1 %v459_v0 }
  0x26   :  { %378 = vmatpush3.bf16.msra.mxu1 %v409_v11 }
  0x27   :  { %379 = vmatprep.subr.bf16.mxu1 %v459_v0 }
  0x2a   :  { %380 = vmatpush3.bf16.msra.mxu1 %v410_v12 }
  0x2b   :  { %381 = vmatprep.subr.bf16.mxu1 %v459_v0 }
  0x2e   :  { %382 = vmatpush3.bf16.msra.mxu1 %v411_v13 }
  0x83   :  { %v61_v9 = vpop.permute.xlu0 %60 }
  0x84   :  { %v65_v10 = vsel %vm62_vm1, %v403_v8, %v61_v9 }
  0x85   :  { %364 = vmatmul.mubr.msk.bf16.vlgmr.msra.gmra.mxu0 %vm81_vm2, %v65_v10 }
  0x86   :  { %391 = vmatprep.mubr.msk.f32.mxu0 %vm460_vm0, %v459_v0 }
 0x145   :  { %v118_v15 = vpop.f32.mrf.mxu0 }
 0x146   :  { %v119_v17 = vadd.f32 %v335_v14, %v118_v15 }
 0x147   :  { %v365_v16 = vpop.f32.mrf.mxu0 }
 0x148   :  { %v125_v21 = vmax.f32 %v119_v17, 0.0 }
 0x149   :  { %v121_v18 = vpop.f32.mrf.mxu0 }
 0x14a   :  { %v122_v19 = vadd.f32 %v335_v14, %v121_v18 }
 0x14b   :  { %v366_v20 = vpop.f32.mrf.mxu0 }
 0x14c   :  { %v126_v22 = vmax.f32 %v122_v19, 0.0 }
 0x14e   :  { %v127_v23 = vpack.c.bf16 %v126_v22, %v125_v21 }
 0x150   :  { %384 = vmatmul.mubr.bf16.vlgmr.msra.gmra.mxu1 %v127_v23 }
 0x210   :  { %v233_v24 = vpop.f32.mrf.mxu1 }
 0x211   :  { %v234_v30 = vadd.f32 %v338_v26, %v233_v24 }
 0x212   :  { %v385_v25 = vpop.f32.mrf.mxu1 }
 0x213   :  { %v240_v32 = vmax.f32 %v234_v30, 0.0 }
 0x214   :  { %v236_v27 = vpop.f32.mrf.mxu1 }
 0x215   :  { %v237_v28 = vadd.f32 %v338_v26, %v236_v27 }
 0x216   :  { %v386_v29 = vpop.f32.mrf.mxu1 }
 0x217   :  { %v241_v31 = vmax.f32 %v237_v28, 0.0 }
 0x219   :  { %388 = vmatpush3.xpose.msra.mxu0 %v241_v31 }
 0x21a   :  { %389 = vmatprep.subr.mxu0 %v459_v0 }
 0x21d   :  { %390 = vmatpush3.xpose.msra.mxu0 %v240_v32 }
 0x220   :  { %392 = vmatmul.mubr.f32.vlgmr.msra.gmra.mxu0 %v242_v33 }
 0x2e0   :  { %v309_v35 = vpop.f32.mrf.mxu0 }
 0x2e1   :  { %v315_v36 = vadd.f32 %v314_v34, %v309_v35 }
 0x2e2   :  { %v393_v37 = vpop.f32.mrf.mxu0 }
 0x2e3   :  { %317 = vst.msk [vmem:[#allocation6] sm:$0x1] %vm316_vm3, %v315_v36 }
 0x2e4   :  { %443 = shalt.err (!%p440_p9)
}
 0x2e5   :  { %327 = dma.vmem_to_hbm [thread:$0]  %s325_s5, 16, %s546_s8, [#allocation5]  }
 0x2e6   :  { %454 = dma.done.wait [#allocation5], 16  }
 0x2e7   :  { %455 = vsyncadd [#allocation5], 4294967280 }
 0x2e8   :  { %331 = vsyncpa [#allocation4], 1 }
 0x2e9   :  { %332 = vsyncpa [#allocation5], 1 }

</bundles_post_ra>
